<compile_context>
chip_gen: v6e
topology: v6e:2x2x1
jax: 0.10.0
libtpu: 0.0.40
codegen_flags: <defaults>
</compile_context>

<pallas_src>
import functools

import jax
import jax.numpy as jnp
from jax import lax
from jax.experimental import pallas as pl
from jax.experimental.pallas import tpu as pltpu

_EPS = 1e-5


def _layernorm(x, gamma, beta):
    mu = jnp.mean(x, axis=-1, keepdims=True)
    d = x - mu
    var = jnp.mean(d * d, axis=-1, keepdims=True)
    return d * lax.rsqrt(var + _EPS) * gamma + beta


def _transformer_block_kernel(
        x_ref, wq_ref, wk_ref, wv_ref, w0_ref, g1_ref, be1_ref,
        w1_ref, b1_ref, w2_ref, b2_ref, g2_ref, be2_ref,
        o_ref, acc_ref, xb_ref, *, heads):
    h = pl.program_id(1)

    @pl.when(h == 0)
    def _init():
        acc_ref[...] = jnp.zeros_like(acc_ref)
        xb_ref[...] = x_ref[...].astype(jnp.bfloat16)   # bf16 MXU copy of x

    xb = xb_ref[...]                                    # (T, dim) bf16

    # Per-head projections (dh^-0.5 scale already folded into Wq columns).
    # Weights are blocked per head by the BlockSpec -> no in-kernel lane
    # slicing of a live (T, 3*_dim) value.
    q = jnp.dot(xb, wq_ref[0], preferred_element_type=jnp.float32)   # (T, dh)
    k = jnp.dot(xb, wk_ref[0], preferred_element_type=jnp.float32)   # (T, dh)
    v = jnp.dot(xb, wv_ref[0], preferred_element_type=jnp.float32)   # (T, dh)

    # Scores + unnormalized softmax in f32; normalization deferred until after
    # the value matmul (one (T,dh) multiply instead of a (T,T) divide) and
    # done with the EUP approximate reciprocal.
    s = lax.dot_general(q.astype(jnp.bfloat16), k.astype(jnp.bfloat16),
                        (((1,), (1,)), ((), ())),
                        preferred_element_type=jnp.float32)          # (T, T)
    m = jnp.max(s, axis=-1, keepdims=True)
    e = jnp.exp(s - m)
    l = jnp.sum(e, axis=-1, keepdims=True)
    o_h = jnp.dot(e.astype(jnp.bfloat16), v.astype(jnp.bfloat16),
                  preferred_element_type=jnp.float32)                # (T, dh)
    o_h = o_h * pl.reciprocal(l, approx=True)

    # concat-over-heads @ W0  ==  sum over heads of  head_out_h @ W0_h_rows.
    acc_ref[...] += jnp.dot(o_h.astype(jnp.bfloat16), w0_ref[0],
                            preferred_element_type=jnp.float32)      # (T, dim)

    @pl.when(h == heads - 1)
    def _finalize():
        x = x_ref[...]                                               # f32 residual
        # TODO(synk): nn.Dropout(p=0.1) is identity at inference; training
        # dropout would need pltpu.prng_seed / pltpu.prng_random_bits masks.
        y = _layernorm(acc_ref[...] + x, g1_ref[...], be1_ref[...])
        h1 = jnp.dot(y.astype(jnp.bfloat16), w1_ref[...],
                     preferred_element_type=jnp.float32) + b1_ref[...]
        h1 = jnp.maximum(h1, 0.0)
        h2 = jnp.dot(h1.astype(jnp.bfloat16), w2_ref[...],
                     preferred_element_type=jnp.float32) + b2_ref[...]
        o_ref[...] = _layernorm(h2 + y, g2_ref[...], be2_ref[...]).astype(o_ref.dtype)


def prepare_params(wqkv_w, w0_w, g1, be1, w1_w, b1, w2_w, b2, g2, be2, heads):
    """One-time weight prep: qkv split/permute, scale fold, transposes, bf16.

    Torch layout: nn.Linear.weight is (out_features, in_features).
    """
    out3, dim = wqkv_w.shape
    _dim = out3 // 3
    dim_head = _dim // heads
    dlb = w1_w.shape[0]
    scale = float(dim_head) ** -0.5

    # einops 'b t (d k h) -> k b h t d':  output column e = d*3*H + k*H + h.
    r = wqkv_w.reshape(dim_head, 3, heads, dim)           # [d, k, h, f]
    w_kqv = jnp.transpose(r, (1, 2, 3, 0))                # [k, h, f, d]
    wq = (w_kqv[0] * scale).astype(jnp.bfloat16)          # (heads, dim, dh), scaled
    wk = w_kqv[1].astype(jnp.bfloat16)
    wv = w_kqv[2].astype(jnp.bfloat16)

    w0 = w0_w.T.reshape(heads, dim_head, dim).astype(jnp.bfloat16)  # rows '(h d)'
    w1 = w1_w.T.astype(jnp.bfloat16)                                # (dim, dlb)
    w2 = w2_w.T.astype(jnp.bfloat16)                                # (dlb, dim)

    return dict(
        wq=wq, wk=wk, wv=wv, w0=w0, w1=w1, w2=w2,
        g1=g1.reshape(1, dim).astype(jnp.float32),
        be1=be1.reshape(1, dim).astype(jnp.float32),
        b1=b1.reshape(1, dlb).astype(jnp.float32),
        b2=b2.reshape(1, dim).astype(jnp.float32),
        g2=g2.reshape(1, dim).astype(jnp.float32),
        be2=be2.reshape(1, dim).astype(jnp.float32),
        heads=heads, dim_head=dim_head, dim=dim, dlb=dlb)


def transformer_block(x, params):
    """Forward pass of TransformerBlock (params from prepare_params)."""
    B, T, dim = x.shape
    heads = params["heads"]
    dim_head = params["dim_head"]
    dlb = params["dlb"]
    _dim = heads * dim_head
    assert T % 8 == 0 or B == 1, "flattened (B*T, dim) blocks need T % 8 == 0"

    x_flat = x.reshape(B * T, dim).astype(jnp.float32)

    kernel = functools.partial(_transformer_block_kernel, heads=heads)

    const2 = lambda b, h: (0, 0)
    head3 = lambda b, h: (h, 0, 0)
    seq2 = lambda b, h: (b, 0)

    flops = 2 * B * T * (dim * 3 * _dim + heads * 2 * T * dim_head
                         + _dim * dim + 2 * dim * dlb)
    bytes_accessed = (4 * 2 * B * T * dim
                      + 2 * (3 * _dim * dim + _dim * dim + 2 * dim * dlb)
                      + 4 * (4 * dim + dlb))
    cost = pl.CostEstimate(flops=flops,
                           transcendentals=B * heads * T * T,
                           bytes_accessed=bytes_accessed)

    out_flat = pl.pallas_call(
        kernel,
        out_shape=jax.ShapeDtypeStruct((B * T, dim), jnp.float32),
        grid=(B, heads),
        in_specs=[
            pl.BlockSpec((T, dim), seq2),                 # x   (one sequence, f32)
            pl.BlockSpec((1, dim, dim_head), head3),      # Wq  (per head, scaled, bf16)
            pl.BlockSpec((1, dim, dim_head), head3),      # Wk
            pl.BlockSpec((1, dim, dim_head), head3),      # Wv
            pl.BlockSpec((1, dim_head, dim), head3),      # W0 rows of this head
            pl.BlockSpec((1, dim), const2),               # LN1 gamma
            pl.BlockSpec((1, dim), const2),               # LN1 beta
            pl.BlockSpec((dim, dlb), const2),             # W1 (bf16)
            pl.BlockSpec((1, dlb), const2),               # b1
            pl.BlockSpec((dlb, dim), const2),             # W2 (bf16)
            pl.BlockSpec((1, dim), const2),               # b2
            pl.BlockSpec((1, dim), const2),               # LN2 gamma
            pl.BlockSpec((1, dim), const2),               # LN2 beta
        ],
        out_specs=pl.BlockSpec((T, dim), seq2),
        scratch_shapes=[
            pltpu.VMEM((T, dim), jnp.float32),    # attention-projection accumulator
            pltpu.VMEM((T, dim), jnp.bfloat16),   # bf16 copy of x for MXU operands
        ],
        compiler_params=pltpu.CompilerParams(
            dimension_semantics=("parallel", "arbitrary"),
            vmem_limit_bytes=32 * 1024 * 1024),
        cost_estimate=cost,
    )(x_flat, params["wq"], params["wk"], params["wv"], params["w0"],
      params["g1"], params["be1"], params["w1"], params["b1"],
      params["w2"], params["b2"], params["g2"], params["be2"])
    return out_flat.reshape(B, T, dim)


def _reference(x, wqkv_w, w0_w, g1, be1, w1_w, b1, w2_w, b2, g2, be2, heads):
    """Pure-JAX f32 mirror of the torch module (dropout = identity)."""
    B, T, dim = x.shape
    dim_head = dim // heads
    _dim = dim_head * heads
    scale = float(dim_head) ** -0.5

    qkv = jnp.einsum("btd,ed->bte", x, wqkv_w)             # (B, T, 3*_dim)
    tmp = qkv.reshape(B, T, dim_head, 3, heads)            # 'b t (d k h)'
    tmp = jnp.transpose(tmp, (3, 0, 4, 1, 2))              # (k, b, h, t, d)
    q, k, v = tmp[0], tmp[1], tmp[2]
    s = jnp.einsum("bhid,bhjd->bhij", q, k) * scale
    a = jax.nn.softmax(s, axis=-1)
    o = jnp.einsum("bhij,bhjd->bhid", a, v)
    o = jnp.transpose(o, (0, 2, 1, 3)).reshape(B, T, _dim)  # 'b h t d -> b t (h d)'
    proj = jnp.einsum("bte,de->btd", o, w0_w)
    y = _layernorm(proj + x, g1, be1)
    hmid = jax.nn.relu(jnp.einsum("btd,ld->btl", y, w1_w) + b1)
    z = jnp.einsum("btl,dl->btd", hmid, w2_w) + b2
    return _layernorm(z + y, g2, be2)


if __name__ == "__main__":
    # Small config: batch=2, seq=8, dim=32, heads=8 (dim_head=4), mlp=64.
    B, T, DIM, HEADS, DLB = 2, 8, 32, 8, 64

    key = jax.random.PRNGKey(0)
    ks = jax.random.split(key, 11)
    x = jax.random.normal(ks[0], (B, T, DIM), dtype=jnp.float32)
    wqkv_w = jax.random.normal(ks[1], (3 * DIM, DIM), dtype=jnp.float32) * 0.05
    w0_w = jax.random.normal(ks[2], (DIM, DIM), dtype=jnp.float32) * 0.05
    g1 = 1.0 + 0.1 * jax.random.normal(ks[3], (DIM,), dtype=jnp.float32)
    be1 = 0.1 * jax.random.normal(ks[4], (DIM,), dtype=jnp.float32)
    w1_w = jax.random.normal(ks[5], (DLB, DIM), dtype=jnp.float32) * 0.05
    b1 = 0.05 * jax.random.normal(ks[6], (DLB,), dtype=jnp.float32)
    w2_w = jax.random.normal(ks[7], (DIM, DLB), dtype=jnp.float32) * 0.05
    b2 = 0.05 * jax.random.normal(ks[8], (DIM,), dtype=jnp.float32)
    g2 = 1.0 + 0.1 * jax.random.normal(ks[9], (DIM,), dtype=jnp.float32)
    be2 = 0.1 * jax.random.normal(ks[10], (DIM,), dtype=jnp.float32)

    params = prepare_params(wqkv_w, w0_w, g1, be1, w1_w, b1, w2_w, b2,
                            g2, be2, HEADS)
    out = transformer_block(x, params)
    out = jax.block_until_ready(out)

    ref = _reference(x, wqkv_w, w0_w, g1, be1, w1_w, b1, w2_w, b2, g2, be2,
                     HEADS)
    assert out.shape == (B, T, DIM)
    max_err = float(jnp.max(jnp.abs(out - ref)))
    # bf16 MXU operands (f32 accumulation) -> looser tolerance than pure f32.
    assert max_err < 3e-2, max_err
    print("KERNEL_OK")
</pallas_src>

<mosaic_0001>
module attributes {stable_mosaic.version = 11 : i64} {
  func.func @_transformer_block_kernel(%arg0: i32, %arg1: i32, %arg2: memref<8x32xf32, #tpu.memory_space<vmem>>, %arg3: memref<1x32x4xbf16, #tpu.memory_space<vmem>>, %arg4: memref<1x32x4xbf16, #tpu.memory_space<vmem>>, %arg5: memref<1x32x4xbf16, #tpu.memory_space<vmem>>, %arg6: memref<1x4x32xbf16, #tpu.memory_space<vmem>>, %arg7: memref<1x32xf32, #tpu.memory_space<vmem>>, %arg8: memref<1x32xf32, #tpu.memory_space<vmem>>, %arg9: memref<32x64xbf16, #tpu.memory_space<vmem>>, %arg10: memref<1x64xf32, #tpu.memory_space<vmem>>, %arg11: memref<64x32xbf16, #tpu.memory_space<vmem>>, %arg12: memref<1x32xf32, #tpu.memory_space<vmem>>, %arg13: memref<1x32xf32, #tpu.memory_space<vmem>>, %arg14: memref<1x32xf32, #tpu.memory_space<vmem>>, %arg15: memref<8x32xf32, #tpu.memory_space<vmem>>, %arg16: memref<8x32xf32, #tpu.memory_space<vmem>>, %arg17: memref<8x32xbf16, #tpu.memory_space<vmem>>) attributes {dimension_semantics = [#tpu.dimension_semantics<parallel>, #tpu.dimension_semantics<arbitrary>], iteration_bounds = array<i64: 2, 8>, scalar_prefetch = 0 : i64, scratch_operands = 2 : i64, tpu.core_type = #tpu.core_type<tc>, window_params = [{transform_indices = @transform_0, window_bounds = array<i64: 8, 32>}, {transform_indices = @transform_1, window_bounds = array<i64: 1, 32, 4>}, {transform_indices = @transform_2, window_bounds = array<i64: 1, 32, 4>}, {transform_indices = @transform_3, window_bounds = array<i64: 1, 32, 4>}, {transform_indices = @transform_4, window_bounds = array<i64: 1, 4, 32>}, {pipeline_mode = #tpu.pipeline_mode<synchronous>, transform_indices = @transform_5, window_bounds = array<i64: 1, 32>}, {pipeline_mode = #tpu.pipeline_mode<synchronous>, transform_indices = @transform_6, window_bounds = array<i64: 1, 32>}, {pipeline_mode = #tpu.pipeline_mode<synchronous>, transform_indices = @transform_7, window_bounds = array<i64: 32, 64>}, {pipeline_mode = #tpu.pipeline_mode<synchronous>, transform_indices = @transform_8, window_bounds = array<i64: 1, 64>}, {pipeline_mode = #tpu.pipeline_mode<synchronous>, transform_indices = @transform_9, window_bounds = array<i64: 64, 32>}, {pipeline_mode = #tpu.pipeline_mode<synchronous>, transform_indices = @transform_10, window_bounds = array<i64: 1, 32>}, {pipeline_mode = #tpu.pipeline_mode<synchronous>, transform_indices = @transform_11, window_bounds = array<i64: 1, 32>}, {pipeline_mode = #tpu.pipeline_mode<synchronous>, transform_indices = @transform_12, window_bounds = array<i64: 1, 32>}, {transform_indices = @transform_13, window_bounds = array<i64: 8, 32>}]} {
    %c0_i32 = arith.constant 0 : i32
    %0 = arith.cmpi eq, %arg1, %c0_i32 : i32
    %1 = arith.extui %0 : i1 to i32
    %c0_i32_0 = arith.constant 0 : i32
    %2 = arith.cmpi ne, %1, %c0_i32_0 : i32
    scf.if %2 {
      %cst_26 = arith.constant 0.000000e+00 : f32
      %39 = vector.broadcast %cst_26 : f32 to vector<8x32xf32>
      %c0_27 = arith.constant 0 : index
      %c0_28 = arith.constant 0 : index
      %40 = vector.load %arg16[%c0_27, %c0_28] : memref<8x32xf32, #tpu.memory_space<vmem>>, vector<8x32xf32>
      tpu.vector_store %arg16[%c0_27, %c0_28], %39 {strides = array<i32>} : memref<8x32xf32, #tpu.memory_space<vmem>>, vector<8x32xf32>,
      %c0_29 = arith.constant 0 : index
      %c0_30 = arith.constant 0 : index
      %41 = vector.load %arg2[%c0_29, %c0_30] : memref<8x32xf32, #tpu.memory_space<vmem>>, vector<8x32xf32>
      %42 = arith.truncf %41 : vector<8x32xf32> to vector<8x32xbf16>
      %c0_31 = arith.constant 0 : index
      %c0_32 = arith.constant 0 : index
      %43 = vector.load %arg17[%c0_31, %c0_32] : memref<8x32xbf16, #tpu.memory_space<vmem>>, vector<8x32xbf16>
      tpu.vector_store %arg17[%c0_31, %c0_32], %42 {strides = array<i32>} : memref<8x32xbf16, #tpu.memory_space<vmem>>, vector<8x32xbf16>,
    } else {
    }
    %c0 = arith.constant 0 : index
    %c0_1 = arith.constant 0 : index
    %3 = vector.load %arg17[%c0, %c0_1] : memref<8x32xbf16, #tpu.memory_space<vmem>>, vector<8x32xbf16>
    %c0_2 = arith.constant 0 : index
    %c0_3 = arith.constant 0 : index
    %c0_4 = arith.constant 0 : index
    %4 = vector.load %arg3[%c0_2, %c0_3, %c0_4] : memref<1x32x4xbf16, #tpu.memory_space<vmem>>, vector<1x32x4xbf16>
    %5 = vector.shape_cast %4 : vector<1x32x4xbf16> to vector<32x4xbf16>
    %cst = arith.constant dense<0.000000e+00> : vector<8x4xf32>
    %6 = tpu.matmul %3, %5, %cst {dimension_numbers = #tpu.dot_dimension_numbers<[1], [0], [0], [1], [0, 0, 1, 1], [], []>} : vector<8x32xbf16>, vector<32x4xbf16>, vector<8x4xf32> -> vector<8x4xf32>
    %c0_5 = arith.constant 0 : index
    %c0_6 = arith.constant 0 : index
    %c0_7 = arith.constant 0 : index
    %7 = vector.load %arg4[%c0_5, %c0_6, %c0_7] : memref<1x32x4xbf16, #tpu.memory_space<vmem>>, vector<1x32x4xbf16>
    %8 = vector.shape_cast %7 : vector<1x32x4xbf16> to vector<32x4xbf16>
    %cst_8 = arith.constant dense<0.000000e+00> : vector<8x4xf32>
    %9 = tpu.matmul %3, %8, %cst_8 {dimension_numbers = #tpu.dot_dimension_numbers<[1], [0], [0], [1], [0, 0, 1, 1], [], []>} : vector<8x32xbf16>, vector<32x4xbf16>, vector<8x4xf32> -> vector<8x4xf32>
    %c0_9 = arith.constant 0 : index
    %c0_10 = arith.constant 0 : index
    %c0_11 = arith.constant 0 : index
    %10 = vector.load %arg5[%c0_9, %c0_10, %c0_11] : memref<1x32x4xbf16, #tpu.memory_space<vmem>>, vector<1x32x4xbf16>
    %11 = vector.shape_cast %10 : vector<1x32x4xbf16> to vector<32x4xbf16>
    %cst_12 = arith.constant dense<0.000000e+00> : vector<8x4xf32>
    %12 = tpu.matmul %3, %11, %cst_12 {dimension_numbers = #tpu.dot_dimension_numbers<[1], [0], [0], [1], [0, 0, 1, 1], [], []>} : vector<8x32xbf16>, vector<32x4xbf16>, vector<8x4xf32> -> vector<8x4xf32>
    %13 = arith.truncf %6 : vector<8x4xf32> to vector<8x4xbf16>
    %14 = arith.truncf %9 : vector<8x4xf32> to vector<8x4xbf16>
    %cst_13 = arith.constant dense<0.000000e+00> : vector<8x8xf32>
    %15 = tpu.matmul %13, %14, %cst_13 {dimension_numbers = #tpu.dot_dimension_numbers<[1], [1], [0], [0], [0, 0, 1, 0], [], []>} : vector<8x4xbf16>, vector<8x4xbf16>, vector<8x8xf32> -> vector<8x8xf32>
    %cst_14 = arith.constant dense<0xFF800000> : vector<8xf32>
    %16 = vector.multi_reduction <maximumf>, %15, %cst_14 [1] : vector<8x8xf32> to vector<8xf32>
    %17 = vector.shape_cast %16 : vector<8xf32> to vector<8x1xf32>
    %18 = vector.broadcast %17 : vector<8x1xf32> to vector<8x8xf32>
    %19 = arith.subf %15, %18 : vector<8x8xf32>
    %20 = math.exp %19 : vector<8x8xf32>
    %cst_15 = arith.constant dense<0.000000e+00> : vector<8xf32>
    %21 = vector.multi_reduction <add>, %20, %cst_15 [1] : vector<8x8xf32> to vector<8xf32>
    %22 = vector.shape_cast %21 : vector<8xf32> to vector<8x1xf32>
    %23 = arith.truncf %20 : vector<8x8xf32> to vector<8x8xbf16>
    %24 = arith.truncf %12 : vector<8x4xf32> to vector<8x4xbf16>
    %cst_16 = arith.constant dense<0.000000e+00> : vector<8x4xf32>
    %25 = tpu.matmul %23, %24, %cst_16 {dimension_numbers = #tpu.dot_dimension_numbers<[1], [0], [0], [1], [0, 0, 1, 1], [], []>} : vector<8x8xbf16>, vector<8x4xbf16>, vector<8x4xf32> -> vector<8x4xf32>
    %26 = tpu.reciprocal %22 {approx = true} : vector<8x1xf32> -> vector<8x1xf32>
    %27 = vector.broadcast %26 : vector<8x1xf32> to vector<8x4xf32>
    %28 = arith.mulf %25, %27 : vector<8x4xf32>
    %c0_17 = arith.constant 0 : index
    %c0_18 = arith.constant 0 : index
    %29 = vector.load %arg16[%c0_17, %c0_18] : memref<8x32xf32, #tpu.memory_space<vmem>>, vector<8x32xf32>
    %30 = arith.truncf %28 : vector<8x4xf32> to vector<8x4xbf16>
    %c0_19 = arith.constant 0 : index
    %c0_20 = arith.constant 0 : index
    %c0_21 = arith.constant 0 : index
    %31 = vector.load %arg6[%c0_19, %c0_20, %c0_21] : memref<1x4x32xbf16, #tpu.memory_space<vmem>>, vector<1x4x32xbf16>
    %32 = vector.shape_cast %31 : vector<1x4x32xbf16> to vector<4x32xbf16>
    %cst_22 = arith.constant dense<0.000000e+00> : vector<8x32xf32>
    %33 = tpu.matmul %30, %32, %cst_22 {dimension_numbers = #tpu.dot_dimension_numbers<[1], [0], [0], [1], [0, 0, 1, 1], [], []>} : vector<8x4xbf16>, vector<4x32xbf16>, vector<8x32xf32> -> vector<8x32xf32>
    %34 = arith.addf %29, %33 : vector<8x32xf32>
    %c0_23 = arith.constant 0 : index
    %c0_24 = arith.constant 0 : index
    %35 = vector.load %arg16[%c0_23, %c0_24] : memref<8x32xf32, #tpu.memory_space<vmem>>, vector<8x32xf32>
    tpu.vector_store %arg16[%c0_23, %c0_24], %34 {strides = array<i32>} : memref<8x32xf32, #tpu.memory_space<vmem>>, vector<8x32xf32>,
    %c7_i32 = arith.constant 7 : i32
    %36 = arith.cmpi eq, %arg1, %c7_i32 : i32
    %37 = arith.extui %36 : i1 to i32
    %c0_i32_25 = arith.constant 0 : i32
    %38 = arith.cmpi ne, %37, %c0_i32_25 : i32
    scf.if %38 {
      %c0_26 = arith.constant 0 : index
      %c0_27 = arith.constant 0 : index
      %39 = vector.load %arg2[%c0_26, %c0_27] : memref<8x32xf32, #tpu.memory_space<vmem>>, vector<8x32xf32>
      %c0_28 = arith.constant 0 : index
      %c0_29 = arith.constant 0 : index
      %40 = vector.load %arg16[%c0_28, %c0_29] : memref<8x32xf32, #tpu.memory_space<vmem>>, vector<8x32xf32>
      %41 = arith.addf %40, %39 : vector<8x32xf32>
      %c0_30 = arith.constant 0 : index
      %c0_31 = arith.constant 0 : index
      %42 = vector.load %arg7[%c0_30, %c0_31] : memref<1x32xf32, #tpu.memory_space<vmem>>, vector<1x32xf32>
      %c0_32 = arith.constant 0 : index
      %c0_33 = arith.constant 0 : index
      %43 = vector.load %arg8[%c0_32, %c0_33] : memref<1x32xf32, #tpu.memory_space<vmem>>, vector<1x32xf32>
      %cst_34 = arith.constant dense<0.000000e+00> : vector<8xf32>
      %44 = vector.multi_reduction <add>, %41, %cst_34 [1] : vector<8x32xf32> to vector<8xf32>
      %45 = vector.shape_cast %44 : vector<8xf32> to vector<8x1xf32>
      %cst_35 = arith.constant 3.200000e+01 : f32
      %46 = vector.broadcast %cst_35 : f32 to vector<8x1xf32>
      %47 = arith.divf %45, %46 : vector<8x1xf32>
      %48 = vector.broadcast %47 : vector<8x1xf32> to vector<8x32xf32>
      %49 = arith.subf %41, %48 : vector<8x32xf32>
      %50 = arith.mulf %49, %49 : vector<8x32xf32>
      %cst_36 = arith.constant dense<0.000000e+00> : vector<8xf32>
      %51 = vector.multi_reduction <add>, %50, %cst_36 [1] : vector<8x32xf32> to vector<8xf32>
      %52 = vector.shape_cast %51 : vector<8xf32> to vector<8x1xf32>
      %cst_37 = arith.constant 3.200000e+01 : f32
      %53 = vector.broadcast %cst_37 : f32 to vector<8x1xf32>
      %54 = arith.divf %52, %53 : vector<8x1xf32>
      %cst_38 = arith.constant 9.99999974E-6 : f32
      %55 = vector.broadcast %cst_38 : f32 to vector<8x1xf32>
      %56 = arith.addf %54, %55 : vector<8x1xf32>
      %57 = math.rsqrt %56 : vector<8x1xf32>
      %58 = vector.broadcast %57 : vector<8x1xf32> to vector<8x32xf32>
      %59 = arith.mulf %49, %58 : vector<8x32xf32>
      %60 = vector.broadcast %42 : vector<1x32xf32> to vector<8x32xf32>
      %61 = arith.mulf %59, %60 : vector<8x32xf32>
      %62 = vector.broadcast %43 : vector<1x32xf32> to vector<8x32xf32>
      %63 = arith.addf %61, %62 : vector<8x32xf32>
      %64 = arith.truncf %63 : vector<8x32xf32> to vector<8x32xbf16>
      %c0_39 = arith.constant 0 : index
      %c0_40 = arith.constant 0 : index
      %65 = vector.load %arg9[%c0_39, %c0_40] : memref<32x64xbf16, #tpu.memory_space<vmem>>, vector<32x64xbf16>
      %cst_41 = arith.constant dense<0.000000e+00> : vector<8x64xf32>
      %66 = tpu.matmul %64, %65, %cst_41 {dimension_numbers = #tpu.dot_dimension_numbers<[1], [0], [0], [1], [0, 0, 1, 1], [], []>} : vector<8x32xbf16>, vector<32x64xbf16>, vector<8x64xf32> -> vector<8x64xf32>
      %c0_42 = arith.constant 0 : index
      %c0_43 = arith.constant 0 : index
      %67 = vector.load %arg10[%c0_42, %c0_43] : memref<1x64xf32, #tpu.memory_space<vmem>>, vector<1x64xf32>
      %68 = vector.broadcast %67 : vector<1x64xf32> to vector<8x64xf32>
      %69 = arith.addf %66, %68 : vector<8x64xf32>
      %cst_44 = arith.constant 0.000000e+00 : f32
      %70 = vector.broadcast %cst_44 : f32 to vector<8x64xf32>
      %71 = arith.maximumf %69, %70 : vector<8x64xf32>
      %72 = arith.truncf %71 : vector<8x64xf32> to vector<8x64xbf16>
      %c0_45 = arith.constant 0 : index
      %c0_46 = arith.constant 0 : index
      %73 = vector.load %arg11[%c0_45, %c0_46] : memref<64x32xbf16, #tpu.memory_space<vmem>>, vector<64x32xbf16>
      %cst_47 = arith.constant dense<0.000000e+00> : vector<8x32xf32>
      %74 = tpu.matmul %72, %73, %cst_47 {dimension_numbers = #tpu.dot_dimension_numbers<[1], [0], [0], [1], [0, 0, 1, 1], [], []>} : vector<8x64xbf16>, vector<64x32xbf16>, vector<8x32xf32> -> vector<8x32xf32>
      %c0_48 = arith.constant 0 : index
      %c0_49 = arith.constant 0 : index
      %75 = vector.load %arg12[%c0_48, %c0_49] : memref<1x32xf32, #tpu.memory_space<vmem>>, vector<1x32xf32>
      %76 = vector.broadcast %75 : vector<1x32xf32> to vector<8x32xf32>
      %77 = arith.addf %74, %76 : vector<8x32xf32>
      %78 = arith.addf %77, %63 : vector<8x32xf32>
      %c0_50 = arith.constant 0 : index
      %c0_51 = arith.constant 0 : index
      %79 = vector.load %arg13[%c0_50, %c0_51] : memref<1x32xf32, #tpu.memory_space<vmem>>, vector<1x32xf32>
      %c0_52 = arith.constant 0 : index
      %c0_53 = arith.constant 0 : index
      %80 = vector.load %arg14[%c0_52, %c0_53] : memref<1x32xf32, #tpu.memory_space<vmem>>, vector<1x32xf32>
      %cst_54 = arith.constant dense<0.000000e+00> : vector<8xf32>
      %81 = vector.multi_reduction <add>, %78, %cst_54 [1] : vector<8x32xf32> to vector<8xf32>
      %82 = vector.shape_cast %81 : vector<8xf32> to vector<8x1xf32>
      %cst_55 = arith.constant 3.200000e+01 : f32
      %83 = vector.broadcast %cst_55 : f32 to vector<8x1xf32>
      %84 = arith.divf %82, %83 : vector<8x1xf32>
      %85 = vector.broadcast %84 : vector<8x1xf32> to vector<8x32xf32>
      %86 = arith.subf %78, %85 : vector<8x32xf32>
      %87 = arith.mulf %86, %86 : vector<8x32xf32>
      %cst_56 = arith.constant dense<0.000000e+00> : vector<8xf32>
      %88 = vector.multi_reduction <add>, %87, %cst_56 [1] : vector<8x32xf32> to vector<8xf32>
      %89 = vector.shape_cast %88 : vector<8xf32> to vector<8x1xf32>
      %cst_57 = arith.constant 3.200000e+01 : f32
      %90 = vector.broadcast %cst_57 : f32 to vector<8x1xf32>
      %91 = arith.divf %89, %90 : vector<8x1xf32>
      %cst_58 = arith.constant 9.99999974E-6 : f32
      %92 = vector.broadcast %cst_58 : f32 to vector<8x1xf32>
      %93 = arith.addf %91, %92 : vector<8x1xf32>
      %94 = math.rsqrt %93 : vector<8x1xf32>
      %95 = vector.broadcast %94 : vector<8x1xf32> to vector<8x32xf32>
      %96 = arith.mulf %86, %95 : vector<8x32xf32>
      %97 = vector.broadcast %79 : vector<1x32xf32> to vector<8x32xf32>
      %98 = arith.mulf %96, %97 : vector<8x32xf32>
      %99 = vector.broadcast %80 : vector<1x32xf32> to vector<8x32xf32>
      %100 = arith.addf %98, %99 : vector<8x32xf32>
      %c0_59 = arith.constant 0 : index
      %c0_60 = arith.constant 0 : index
      %101 = vector.load %arg15[%c0_59, %c0_60] : memref<8x32xf32, #tpu.memory_space<vmem>>, vector<8x32xf32>
      tpu.vector_store %arg15[%c0_59, %c0_60], %100 {strides = array<i32>} : memref<8x32xf32, #tpu.memory_space<vmem>>, vector<8x32xf32>,
    } else {
    }
    return
  }
  func.func @transform_0(%arg0: i32, %arg1: i32) -> (i32, i32) {
    %c0_i32 = arith.constant 0 : i32
    %c0_i32_0 = arith.constant 0 : i32
    return %arg0, %c0_i32 : i32, i32
  }
  func.func @transform_1(%arg0: i32, %arg1: i32) -> (i32, i32, i32) {
    %c0_i32 = arith.constant 0 : i32
    %c0_i32_0 = arith.constant 0 : i32
    %c0_i32_1 = arith.constant 0 : i32
    return %arg1, %c0_i32, %c0_i32_0 : i32, i32, i32
  }
  func.func @transform_2(%arg0: i32, %arg1: i32) -> (i32, i32, i32) {
    %c0_i32 = arith.constant 0 : i32
    %c0_i32_0 = arith.constant 0 : i32
    %c0_i32_1 = arith.constant 0 : i32
    return %arg1, %c0_i32, %c0_i32_0 : i32, i32, i32
  }
  func.func @transform_3(%arg0: i32, %arg1: i32) -> (i32, i32, i32) {
    %c0_i32 = arith.constant 0 : i32
    %c0_i32_0 = arith.constant 0 : i32
    %c0_i32_1 = arith.constant 0 : i32
    return %arg1, %c0_i32, %c0_i32_0 : i32, i32, i32
  }
  func.func @transform_4(%arg0: i32, %arg1: i32) -> (i32, i32, i32) {
    %c0_i32 = arith.constant 0 : i32
    %c0_i32_0 = arith.constant 0 : i32
    %c0_i32_1 = arith.constant 0 : i32
    return %arg1, %c0_i32, %c0_i32_0 : i32, i32, i32
  }
  func.func @transform_5(%arg0: i32, %arg1: i32) -> (i32, i32) {
    %c0_i32 = arith.constant 0 : i32
    %c0_i32_0 = arith.constant 0 : i32
    %c0_i32_1 = arith.constant 0 : i32
    return %c0_i32, %c0_i32_0 : i32, i32
  }
  func.func @transform_6(%arg0: i32, %arg1: i32) -> (i32, i32) {
    %c0_i32 = arith.constant 0 : i32
    %c0_i32_0 = arith.constant 0 : i32
    %c0_i32_1 = arith.constant 0 : i32
    return %c0_i32, %c0_i32_0 : i32, i32
  }
  func.func @transform_7(%arg0: i32, %arg1: i32) -> (i32, i32) {
    %c0_i32 = arith.constant 0 : i32
    %c0_i32_0 = arith.constant 0 : i32
    %c0_i32_1 = arith.constant 0 : i32
    return %c0_i32, %c0_i32_0 : i32, i32
  }
  func.func @transform_8(%arg0: i32, %arg1: i32) -> (i32, i32) {
    %c0_i32 = arith.constant 0 : i32
    %c0_i32_0 = arith.constant 0 : i32
    %c0_i32_1 = arith.constant 0 : i32
    return %c0_i32, %c0_i32_0 : i32, i32
  }
  func.func @transform_9(%arg0: i32, %arg1: i32) -> (i32, i32) {
    %c0_i32 = arith.constant 0 : i32
    %c0_i32_0 = arith.constant 0 : i32
    %c0_i32_1 = arith.constant 0 : i32
    return %c0_i32, %c0_i32_0 : i32, i32
  }
  func.func @transform_10(%arg0: i32, %arg1: i32) -> (i32, i32) {
    %c0_i32 = arith.constant 0 : i32
    %c0_i32_0 = arith.constant 0 : i32
    %c0_i32_1 = arith.constant 0 : i32
    return %c0_i32, %c0_i32_0 : i32, i32
  }
  func.func @transform_11(%arg0: i32, %arg1: i32) -> (i32, i32) {
    %c0_i32 = arith.constant 0 : i32
    %c0_i32_0 = arith.constant 0 : i32
    %c0_i32_1 = arith.constant 0 : i32
    return %c0_i32, %c0_i32_0 : i32, i32
  }
  func.func @transform_12(%arg0: i32, %arg1: i32) -> (i32, i32) {
    %c0_i32 = arith.constant 0 : i32
    %c0_i32_0 = arith.constant 0 : i32
    %c0_i32_1 = arith.constant 0 : i32
    return %c0_i32, %c0_i32_0 : i32, i32
  }
  func.func @transform_13(%arg0: i32, %arg1: i32) -> (i32, i32) {
    %c0_i32 = arith.constant 0 : i32
    %c0_i32_0 = arith.constant 0 : i32
    return %arg0, %c0_i32 : i32, i32
  }
}

</mosaic_0001>

<bundles_post_ra>
// kernel: tpu_custom_call.1
= control target key start
LH: loop header
LB: loop body
LE: loop exit
PB: predicated region body
PF: predicated region fallthrough
CT: control target
= control target key end

     0   :  { %s1838_s0 = inlined_call_operand.vmem [shape: f32[16,32], index: 0, kind: input, shape index: {}]   ;;  %s1839_s1 = inlined_call_operand.vmem [shape: bf16[8,32,4], index: 1, kind: input, shape index: {}]   ;;  %s1840_s2 = inlined_call_operand.vmem [shape: bf16[8,32,4], index: 2, kind: input, shape index: {}]   ;;  %s1841_s3 = inlined_call_operand.vmem [shape: bf16[8,32,4], index: 3, kind: input, shape index: {}]   ;;  %s1842_s4 = inlined_call_operand.vmem [shape: bf16[8,4,32], index: 4, kind: input, shape index: {}]   ;;  %s1843_s5 = inlined_call_operand.vmem [shape: f32[1,32], index: 5, kind: input, shape index: {}]   ;;  %s1844_s6 = inlined_call_operand.vmem [shape: f32[1,32], index: 6, kind: input, shape index: {}]   ;;  %s1845_s7 = inlined_call_operand.vmem [shape: bf16[32,64], index: 7, kind: input, shape index: {}]   ;;  %s1846_s8 = inlined_call_operand.vmem [shape: f32[1,64], index: 8, kind: input, shape index: {}]   ;;  %s1847_s9 = inlined_call_operand.vmem [shape: bf16[64,32], index: 9, kind: input, shape index: {}]   ;;  %s1848_s10 = inlined_call_operand.vmem [shape: f32[1,32], index: 10, kind: input, shape index: {}]   ;;  %s1849_s11 = inlined_call_operand.vmem [shape: f32[1,32], index: 11, kind: input, shape index: {}]   ;;  %s1850_s12 = inlined_call_operand.vmem [shape: f32[1,32], index: 12, kind: input, shape index: {}]   ;;  %s1851_s13 = inlined_call_operand.hbm [shape: f32[16,32], index: 13, kind: output, shape index: {}]  }
   0x1   :  { %1866 = sst [smem:[#allocation19_spill]] %s1849_s11 }
   0x2   :  { %1867 = sst [smem:[#allocation20_spill]] %s1850_s12 }
   0x3   :  { %1868 = sst [smem:[#allocation21_spill]] %s1851_s13 }
   0x4   :  { %18 = vsyncpa [#allocation5], 0 }
   0x5   :  { %20 = vsyncpa [#allocation5 + $0x1], 0  ;;  %s1623_s25 = smov 0   ;;  %s1625_s26 = smov 0  }
   0x6   :  { %s1627_s27 = smov 0   ;;  %s1629_s28 = smov 0  }
   0x7   :  { %s1631_s29 = smov 0   ;;  %s1633_s30 = smov 0  }
   0x8   :  { %s1635_s14 = smov 0   ;;  %s1637_s15 = smov 0  }
   0x9 LB: > { %1869 = sst [smem:[#allocation7_spill]] %s1517_s25  ;;  %s1223_s16 = sadd.s32 4294967295, %s1545_s15   ;;  %s1545_s15 = sphi %s1637_s15, %s26_s15   ;;  %s1541_s14 = sphi %s1635_s14, %s1899_s14   ;;  %s1537_s30 = sphi %s1633_s30, %s1898_s30   ;;  %s1533_s29 = sphi %s1631_s29, %s1897_s29   ;;  %s1529_s28 = sphi %s1629_s28, %s1896_s28   ;;  %s1525_s27 = sphi %s1627_s27, %s1895_s27   ;;  %s1521_s26 = sphi %s1625_s26, %s1894_s26   ;;  %s1517_s25 = sphi %s1623_s25, %s1893_s25  }
   0xa   : > { %1870 = sst [smem:[#allocation8_spill]] %s1521_s26  ;;  %s1224_s17 = sadd.s32 4294967294, %s1545_s15  }
   0xb   : > { %1871 = sst [smem:[#allocation9_spill]] %s1525_s27  ;;  %s35_s18 = sadd.s32 1, %s1537_s30 }
   0xc   : > { %1872 = sst [smem:[#allocation10_spill]] %s1533_s29  ;;  %p36_p0 = scmp.ge.s32.totalorder %s35_s18, 8 }
   0xd   : > { %1873 = sst [smem:[#allocation11_spill]] %s1537_s30  ;;  %s38_s19 = sadd.s32 1, %s1541_s14 }
   0xe   : > { %1874 = sst [smem:[#allocation12_spill]] %s1541_s14  ;;  %p353_p1 = scmp.ne.s32.totalorder %s1525_s27, %s1521_s26 }
   0xf   : > { %1875 = sst [smem:[#allocation13_spill]] %s1545_s15  ;;  %p354_p2 = scmp.eq.s32.totalorder %s1223_s16, 15 }
  0x10   : > { %s1901_s18 = smov (%p36_p0, %s35_s18), 0  ;;  %s1903_s19 = smov (!%p36_p0, %s38_s19), %s1541_s14 }
  0x11   : > { %1876 = sst [smem:[#allocation14_spill]] %s1901_s18  ;;  %p1672_p3 = por %p354_p2, %p353_p1 }
  0x12   : > { %p359_p4 = scmp.ne.s32.totalorder %s1521_s26, %s1517_s25  ;;  %p40_p5 = scmp.ge.s32.totalorder %s1903_s19, 2 }
  0x13   : > { %s1877_s20 = scalar_select %p1672_p3, 1, 0 }
  0x14   : > { %p360_p6 = scmp.eq.s32.totalorder %s1224_s17, 15  ;;  %p1227_p7 = scmp.ge.s32.totalorder %s1545_s15, 1 }
  0x15   : > { %1878 = sst [smem:[#allocation15_spill]] %s1877_s20  ;;  %p440_p8 = scmp.lt.s32.totalorder %s1545_s15, 17 }
  0x16   : > { %s1905_s19 = smov (%p40_p5, %s1903_s19), 0  ;;  %p1682_p9 = por %p360_p6, %p359_p4 }
  0x17   : > { %1879 = sst [smem:[#allocation16_spill]] %s1905_s19  ;;  %p441_p10 = pnand %p1227_p7, %p440_p8 }
  0x18   : > { %s1880_s21 = scalar_select %p1682_p9, 1, 0 }
  0x19   : > { %s340_s22 = ssub.s32 %s1541_s14, %s1905_s19  ;;  %s343_s23 = sadd.s32 1, %s1525_s27 }
  0x1a   : > { %1881 = sst [smem:[#allocation17_spill]] %s1880_s21  ;;  %p341_p11 = scmp.eq.s32.totalorder %s340_s22, 0 }
  0x1b   : > { %444 = sbr.rel (%p441_p10) target bundleno = 2049 (0x801), region = 72  ;;  %s1861_s16 = sand.u32 (!%p441_p10), 1, %s1521_s26  }
  0x1c   : > { %s1690_s24 = scalar_select %p341_p11, %s1525_s27, %s343_s23  }
  0x1d   : > { %p502_p12 = scmp.lt.s32.totalorder (!%p441_p10), %s1533_s29, 1  ;;  %s1696_s17 = sshll.u32 (!%p441_p10), %s1861_s16, 3 }
  0x1e   : > { %1882 = sst [smem:[#allocation18_spill]] %s1690_s24  ;;  %p506_p13 = scmp.lt.s32.totalorder (!%p441_p10), %s1529_s28, 7 }
  0x1f   : > { %s501_s22 = scalar_lea.vmem (!%p441_p10), [#allocation4], %s1696_s17  ;;  %p1237_p0 = scmp.ne.s32.totalorder (!%p441_p10), %s1529_s28, 0 }
  0x20   : > { %s503_s18 = scalar_select %p502_p12, %s1533_s29, 1 }
  0x21   : > { %s507_s19 = scalar_select %p506_p13, %s1529_s28, 7 }
  0x22   : > { %s1229_s14 = sshll.u32 %s503_s18, 3  ;;  %529 = sbr.rel (%p1237_p0) target bundleno = 43 (0x2b), region = 76 }
  0x23   : > { %s1704_s30 = scalar_lea.vmem %s1838_s0, %s1229_s14  ;;  %s1269_s24 = sshll.u32 %s507_s19, 4 }
  0x24   : > { %s510_s25 = scalar_lea.vmem %s1839_s1, %s1269_s24  ;;  %s515_s16 = scalar_lea.vmem %s1840_s2, %s1269_s24 }
  0x25   : > { %s1715_s29 = scalar_lea.vmem %s1841_s3, %s1269_s24  ;;  %s1236_s18 = sshll.u32 %s507_s19, 1 }
  0x26   : > { %s1720_s14 = scalar_lea.vmem %s1842_s4, %s1236_s18 }
  0x27   : > { %vm530_vm0 = vcmask 261120   ;;  %v532_v0 = vld [vmem:[%s1704_s30] sm:$0xff]  ;;  %vm534_vm1 = vcmask 257024   ;;  %v1547_v1 = vmov 0.0  }
  0x28   : > { %531 = vst.msk [vmem:[#allocation2] sm:$0xff] %vm530_vm0, %v1547_v1  ;;  %v533_v2 = vpack.c.bf16 %v532_v0, %v532_v0 }
  0x2a   : > { %535 = vst.msk [vmem:[#allocation3] sm:$0xf] %vm534_vm1, %v533_v2 }
  0x2b PF: > { %v1433_v3 = vld [vmem:[%s515_s16 + $0x8] sm:$0xff]   ;;  %v1548_v4 = vmov 0.0   ;;  %v1435_v6 = vld [vmem:[%s515_s16] sm:$0xff]   ;;  %vm1549_vm2 = vmmov 0   ;;  %vm553_vm3 = vcmask 261120   ;;  %vm711_vm4 = vcmask 31744  }
  0x2c   : > { %1303 = vmatprep.subr.bf16.mxu1 %v1548_v4  ;;  %1295 = vmatprep.subr.bf16.mxu0 %v1548_v4  ;;  %v1434_v5 = vld [vmem:[%s510_s25 + $0x8] sm:$0xff]   ;;  %v1436_v7 = vld [vmem:[%s510_s25] sm:$0xff]   ;;  %vm758_vm5 = vcmask 64512   ;;  %vm773_vm6 = vcmask 1043456   ;;  %vm825_vm7 = vcmask 1041408   ;;  %p1250_p1 = scmp.ne.s32.totalorder %s1529_s28, 7 }
  0x2d   : > { %1304 = vmatpush3.bf16.msra.mxu1 %v1433_v3  ;;  %1307 = vmatprep.mubr.msk.bf16.mxu1 %vm1549_vm2, %v1548_v4  ;;  %v1437_v9 = vld [vmem:[%s1715_s29 + $0x8] sm:$0xff]   ;;  %v1438_v10 = vld [vmem:[%s1715_s29] sm:$0xff]   ;;  %s1883_s26 = sld [smem:[#allocation19_spill]] (!%p1250_p1) }
  0x2e   : > { %1296 = vmatpush3.bf16.msra.mxu0 %v1434_v5  ;;  %1305 = vmatprep.subr.bf16.mxu1 %v1548_v4  ;;  %v821_v39 = vld [vmem:[%s1720_s14] sm:$0x3]  ;;  %s1884_s29 = sld [smem:[#allocation20_spill]] (!%p1250_p1) }
  0x2f   : > { %1297 = vmatprep.subr.bf16.mxu0 %v1548_v4  ;;  %1299 = vmatprep.mubr.msk.bf16.mxu0 %vm1549_vm2, %v1548_v4  ;;  %v827_v40 = vsel %vm825_vm7, %v821_v39, 0  ;;  %v819_v49 = vld [vmem:[#allocation2] sm:$0xff] }
  0x31   : > { %1306 = vmatpush3.bf16.msra.mxu1 %v1435_v6  ;;  %v536_v8 = vld [vmem:[#allocation3] sm:$0xf] }
  0x32   : > { %1298 = vmatpush3.bf16.msra.mxu0 %v1436_v7  ;;  %1319 = vmatprep.subr.bf16.mxu1 %v1548_v4 }
  0x33   : > { %1311 = vmatprep.subr.bf16.mxu0 %v1548_v4 }
  0x34   : > { %1308 = vmatmul.mubr.msk.bf16.vlgmr.msra.gmra.mxu1 %vm553_vm3, %v536_v8 }
  0x35   : > { %1300 = vmatmul.mubr.msk.bf16.vlgmr.msra.gmra.mxu0 %vm553_vm3, %v536_v8  ;;  %1321 = vmatprep.mubr.msk.bf16.mxu1 %vm1549_vm2, %v1548_v4 }
  0x36   : > { %1315 = vmatprep.mubr.msk.bf16.mxu0 %vm1549_vm2, %v1548_v4  ;;  %1312 = vmatpush3.bf16.msra.mxu0 %v1437_v9 }
  0x37   : > { %1313 = vmatprep.subr.bf16.mxu0 %v1548_v4 }
  0x3a   : > { %1314 = vmatpush3.bf16.msra.mxu0 %v1438_v10 }
  0x3b   : > { %1325 = vmatprep.subr.bf16.mxu0 %v1548_v4 }
  0x3d   : > { %1316 = vmatmul.mubr.msk.bf16.vlgmr.msra.gmra.mxu0 %vm553_vm3, %v536_v8 }
  0x3e   : > { %1327 = vmatprep.mubr.msk.bf16.mxu0 %vm1549_vm2, %v1548_v4 }
  0xf4   : > { %v647_v11 = vpop.f32.mrf.mxu1 }
  0xf5   : > { %v710_v12 = vpack.c.bf16 %v647_v11, %v647_v11  ;;  %v591_v13 = vpop.f32.mrf.mxu0 }
  0xf6   : > { %v1309_v14 = vpop.f32.mrf.mxu1  ;;  %v709_v20 = vpack.c.bf16 %v591_v13, %v591_v13 }
  0xf7   : > { %v716_v15 = vsel %vm711_vm4, %v710_v12, 0  ;;  %v1301_v16 = vpop.f32.mrf.mxu0 }
  0xf8   : > { %v650_v17 = vpop.f32.mrf.mxu1  ;;  %1320 = vmatpush3.bf16.xpose.msra.mxu1 %v716_v15 }
  0xf9   : > { %v594_v18 = vpop.f32.mrf.mxu0  ;;  %1331 = vmatprep.subr.bf16.mxu1 %v1548_v4 }
  0xfa   : > { %v1310_v19 = vpop.f32.mrf.mxu1 }
  0xfb   : > { %v1302_v21 = vpop.f32.mrf.mxu0 }
  0xfd   : > { %v703_v27 = vpop.f32.mrf.mxu0 }
  0xfe   : > { %v769_v28 = vpack.c.bf16 %v703_v27, %v703_v27 }
  0xff   : > { %1322 = vmatmul.mubr.msk.bf16.vlgmr.msra.gmra.mxu1 %vm711_vm4, %v709_v20  ;;  %v1317_v29 = vpop.f32.mrf.mxu0 }
 0x100   : > { %1333 = vmatprep.mubr.msk.bf16.mxu1 %vm1549_vm2, %v1548_v4  ;;  %v775_v30 = vsel %vm773_vm6, %v769_v28, 0  ;;  %1332 = vmatpush3.bf16.msra.mxu1 %v827_v40 }
 0x101   : > { %v706_v31 = vpop.f32.mrf.mxu0  ;;  %1326 = vmatpush3.bf16.msra.mxu0 %v775_v30 }
 0x103   : > { %v1318_v32 = vpop.f32.mrf.mxu0 }
 0x1bf   : > { %v752_v22 = vpop.f32.mrf.mxu1 }
 0x1c0   : > { %v759_v23 = vsel %vm758_vm5, %v752_v22, -inf }
 0x1c1   : > { %760 = vmax.xlane.f32.xlu0 %v759_v23  ;;  %v1323_v24 = vpop.f32.mrf.mxu1 }
 0x1c3   : > { %v755_v25 = vpop.f32.mrf.mxu1 }
 0x1c5   : > { %v1324_v26 = vpop.f32.mrf.mxu1 }
 0x24a   : > { %v761_v33 = vpop.xlane.xlu0 %760 }
 0x24b   : > { %v762_v34 = vsub.f32 %v752_v22, %v761_v33 }
 0x24d   : > { %v763_v35 = vmul.f32 1.442695, %v762_v34 }
 0x24f   : > { %1439 = vpow2.f32 %v763_v35 }
 0x25c   : > { %v1440_v36 = vpop.eup %1439 }
 0x25d   : > { %v765_v37 = vsel %vm758_vm5, %v1440_v36, 0.0  ;;  %v768_v38 = vpack.c.bf16 %v1440_v36, %v1440_v36 }
 0x25e   : > { %766 = vadd.xlane.f32.xlu0 %v765_v37 }
 0x25f   : > { %1328 = vmatmul.mubr.msk.bf16.vlgmr.msra.gmra.mxu0 %vm758_vm5, %v768_v38 }
 0x2e7   : > { %v767_v41 = vpop.xlane.xlu0 %766 }
 0x2e8   : > { %1441 = vrcp.f32 %v767_v41 }
 0x2f5   : > { %v1442_v42 = vpop.eup %1441 }
 0x31f   : > { %v811_v43 = vpop.f32.mrf.mxu0 }
 0x320   : > { %v818_v44 = vmul.f32 %v1442_v42, %v811_v43 }
 0x321   : > { %v1329_v45 = vpop.f32.mrf.mxu0 }
 0x322   : > { %v820_v46 = vpack.c.bf16 %v818_v44, %v818_v44 }
 0x323   : > { %v814_v47 = vpop.f32.mrf.mxu0 }
 0x324   : > { %1334 = vmatmul.mubr.msk.bf16.vlgmr.msra.gmra.mxu1 %vm711_vm4, %v820_v46 }
 0x325   : > { %v1330_v48 = vpop.f32.mrf.mxu0 }
 0x3e4   : > { %v863_v50 = vpop.f32.mrf.mxu1 }
 0x3e5   : > { %v869_v51 = vadd.f32 %v863_v50, %v819_v49 }
 0x3e6   : > { %v1335_v52 = vpop.f32.mrf.mxu1  ;;  %874 = sbr.rel (%p1250_p1) target bundleno = 2024 (0x7e8), region = 80 }
 0x3e7   : > { %870 = vst.msk [vmem:[#allocation2] sm:$0xff] %vm553_vm3, %v869_v51 }
 0x3e8   : > { %v866_v53 = vpop.f32.mrf.mxu1 }
 0x3ea   : > { %v1336_v54 = vpop.f32.mrf.mxu1 }
 0x3eb   : > { %v875_v55 = vld [vmem:[%s1704_s30] sm:$0xff]  ;;  %v1443_v0 = vld [vmem:[%s1845_s7 + $0x8] sm:$0xff]   ;;  %v1550_v1 = vmov 0.0   ;;  %vm1551_vm8 = vmmov 0   ;;  %v1445_v3 = vld [vmem:[%s1847_s9 + $0x18] sm:$0xff]   ;;  %vm1016_vm9 = vcmask 523264  }
 0x3ec   : > { %1337 = vmatprep.subr.bf16.mxu0 %v1550_v1  ;;  %1341 = vmatprep.mubr.msk.bf16.mxu0 %vm1551_vm8, %v1550_v1  ;;  %v1444_v2 = vld [vmem:[%s1845_s7] sm:$0xff]   ;;  %v1446_v4 = vld [vmem:[%s1847_s9 + $0x10] sm:$0xff]   ;;  %v1447_v15 = vld [vmem:[%s1847_s9 + $0x8] sm:$0xff]  }
 0x3ed   : > { %1338 = vmatpush3.bf16.msra.mxu0 %v1443_v0  ;;  %1345 = vmatprep.subr.bf16.mxu1 %v1550_v1  ;;  %v1251_v9 = vld [vmem:[%s1843_s5] ss:$0 sm:$0xff] }
 0x3ee   : > { %v876_v56 = vld [vmem:[#allocation2] sm:$0xff]  ;;  %1339 = vmatprep.subr.bf16.mxu0 %v1550_v1  ;;  %1353 = vmatprep.mubr.msk.bf16.mxu1 %vm1551_vm8, %v1550_v1 }
 0x3ef   : > { %v877_v57 = vadd.f32 %v876_v56, %v875_v55  ;;  %1346 = vmatpush3.bf16.msra.mxu1 %v1445_v3  ;;  %v1252_v11 = vld [vmem:[%s1844_s6] ss:$0 sm:$0xff] }
 0x3f0   : > { %1347 = vmatprep.subr.bf16.mxu1 %v1550_v1  ;;  %v1448_v16 = vld [vmem:[%s1847_s9] sm:$0xff]  }
 0x3f1   : > { %v880_v58 = vsel %vm553_vm3, %v877_v57, 0.0  ;;  %1340 = vmatpush3.bf16.msra.mxu0 %v1444_v2  ;;  %v1253_v17 = vld [vmem:[%s1846_s8] ss:$0 sm:$0xff] }
 0x3f2   : > { %881 = vadd.xlane.f32.xlu0 %v880_v58  ;;  %v1257_v25 = vld [vmem:[%s1848_s10] ss:$0 sm:$0xff] }
 0x3f3   : > { %1348 = vmatpush3.bf16.msra.mxu1 %v1446_v4  ;;  %v1263_v42 = vld [vmem:[%s1883_s26] ss:$0 sm:$0xff] }
 0x3f4   : > { %1349 = vmatprep.subr.bf16.mxu1 %v1550_v1  ;;  %v1264_v44 = vld [vmem:[%s1884_s29] ss:$0 sm:$0xff] }
 0x3f7   : > { %1350 = vmatpush3.bf16.msra.mxu1 %v1447_v15 }
 0x3f8   : > { %1351 = vmatprep.subr.bf16.mxu1 %v1550_v1 }
 0x3fb   : > { %1352 = vmatpush3.bf16.msra.mxu1 %v1448_v16 }
 0x47b   : > { %v882_v59 = vpop.xlane.xlu0 %881 }
 0x47c   : > { %v884_v60 = vmul.f32 0.03125, %v882_v59 }
 0x47e   : > { %v885_v61 = vsub.f32 %v877_v57, %v884_v60 }
 0x480   : > { %v886_v62 = vmul.f32 %v885_v61, %v885_v61 }
 0x482   : > { %v887_v63 = vsel %vm553_vm3, %v886_v62, 0.0 }
 0x483   : > { %888 = vadd.xlane.f32.xlu0 %v887_v63 }
 0x50c   : > { %v889_v5 = vpop.xlane.xlu0 %888 }
 0x50d   : > { %v890_v6 = vmul.f32 0.03125, %v889_v5 }
 0x50f   : > { %v891_v7 = vadd.f32 1e-05, %v890_v6 }
 0x511   : > { %1449 = vrsqrt.f32 %v891_v7 }
 0x51e   : > { %v1450_v8 = vpop.eup %1449 }
 0x51f   : > { %v893_v10 = vmul.f32 %v1450_v8, %v885_v61 }
 0x521   : > { %v900_v12 = vmul.f32 %v1251_v9, %v893_v10 }
 0x523   : > { %v907_v13 = vadd.f32 %v1252_v11, %v900_v12 }
 0x525   : > { %v908_v14 = vpack.c.bf16 %v907_v13, %v907_v13 }
 0x527   : > { %1342 = vmatmul.mubr.msk.bf16.vlgmr.msra.gmra.mxu0 %vm553_vm3, %v908_v14 }
 0x5e7   : > { %v969_v18 = vpop.f32.mrf.mxu0 }
 0x5e8   : > { %v970_v19 = vadd.f32 %v1253_v17, %v969_v18 }
 0x5e9   : > { %v1343_v20 = vpop.f32.mrf.mxu0 }
 0x5ea   : > { %v975_v21 = vmax.f32 %v970_v19, 0.0 }
 0x5eb   : > { %v972_v22 = vpop.f32.mrf.mxu0 }
 0x5ec   : > { %v976_v23 = vpack.c.bf16 %v975_v21, %v975_v21 }
 0x5ed   : > { %v1344_v24 = vpop.f32.mrf.mxu0 }
 0x5ee   : > { %1354 = vmatmul.mubr.msk.bf16.vlgmr.msra.gmra.mxu1 %vm1016_vm9, %v976_v23 }
 0x6ae   : > { %v1054_v26 = vpop.f32.mrf.mxu1 }
 0x6af   : > { %v1055_v27 = vadd.f32 %v1257_v25, %v1054_v26 }
 0x6b0   : > { %v1355_v28 = vpop.f32.mrf.mxu1 }
 0x6b1   : > { %v1060_v29 = vadd.f32 %v1055_v27, %v907_v13 }
 0x6b2   : > { %v1057_v30 = vpop.f32.mrf.mxu1 }
 0x6b3   : > { %v1063_v31 = vsel %vm553_vm3, %v1060_v29, 0.0 }
 0x6b4   : > { %1064 = vadd.xlane.f32.xlu1 %v1063_v31  ;;  %v1356_v32 = vpop.f32.mrf.mxu1 }
 0x73d   : > { %v1065_v33 = vpop.xlane.xlu1 %1064 }
 0x73e   : > { %v1066_v34 = vmul.f32 0.03125, %v1065_v33 }
 0x740   : > { %v1067_v35 = vsub.f32 %v1060_v29, %v1066_v34 }
 0x742   : > { %v1068_v36 = vmul.f32 %v1067_v35, %v1067_v35 }
 0x744   : > { %v1069_v37 = vsel %vm553_vm3, %v1068_v36, 0.0 }
 0x745   : > { %1070 = vadd.xlane.f32.xlu1 %v1069_v37 }
 0x7ce   : > { %v1071_v38 = vpop.xlane.xlu1 %1070 }
 0x7cf   : > { %v1072_v39 = vmul.f32 0.03125, %v1071_v38 }
 0x7d1   : > { %v1073_v40 = vadd.f32 1e-05, %v1072_v39 }
 0x7d3   : > { %1451 = vrsqrt.f32 %v1073_v40 }
 0x7e0   : > { %v1452_v41 = vpop.eup %1451 }
 0x7e1   : > { %v1075_v43 = vmul.f32 %v1452_v41, %v1067_v35 }
 0x7e3   : > { %v1082_v45 = vmul.f32 %v1263_v42, %v1075_v43 }
 0x7e5   : > { %v1089_v46 = vadd.f32 %v1264_v44, %v1082_v45 }
 0x7e7   : > { %1090 = vst.msk [vmem:[%s501_s22] sm:$0xff] %vm553_vm3, %v1089_v46 }
 0x7e8 PF: > { %s1885_s30 = sld [smem:[#allocation10_spill]]  ;;  %s1105_s18 = sshll.u32 %s501_s22, 4  ;;  %s1106_s18 = int_to_ptr.vmem [resolvable:$true] %s1105_s18 }
 0x7e9   : > { %s1886_s15 = sld [smem:[#allocation8_spill]]  ;;  %s1453_s12 = scalar_lea.vmem %s1106_s18, 128 }
 0x7ea   : > { %s1888_s16 = sld [smem:[#allocation21_spill]]  ;;  %p1454_p2 = scmp.ne.s32.totalorder %s1106_s18, %s1453_s12 }
 0x7eb   : > { %s1552_s13 = smov [#allocation4]  }
 0x7ec   : > { %p1455_p4 = pnand %p1454_p2, %p1672_p3  ;;  %s1457_s25 = sshll.u32 %s1552_s13, 4  ;;  %s1458_s25 = int_to_ptr.vmem [resolvable:$false] %s1457_s25 }
 0x7ed   : > { %s1459_s26 = scalar_lea.vmem %s1458_s25, 256  ;;  %p1460_p6 = scmp.lt.s32.totalorder %s1106_s18, %s1458_s25 }
 0x7ee   : > { %s1266_s20 = sshll.u32 %s1885_s30, 7  ;;  %p1456_p5 = pneg %p1455_p4 }
 0x7ef   : > { %s1889_s14 = sand.u32 1, %s1886_s15   ;;  %p1461_p7 = scmp.lt.s32.totalorder %s1459_s26, %s1453_s12 }
 0x7f0   : > { %s1103_s23 = scalar_lea.hbm %s1888_s16, %s1266_s20  ;;  %s1092_s11 = scalar_lea.sflag [#allocation5], %s1889_s14 }
 0x7f1   : > { %p1462_p8 = por %p1461_p7, %p1460_p6 }
 0x7f3   : > { %p1463_p10 = pnand %p1462_p8, %p1456_p5 }
 0x7f5   : > { %1466 = shalt.err (!%p1463_p10)
}
 0x7f6   : > { %s1467_s27 = scalar_lea.hbm %s1103_s23, 128  ;;  %s1471_s28 = scalar_lea.hbm %s1888_s16, 256 }
 0x7f7   : > { %p1468_p11 = scmp.ne.s32.totalorder %s1103_s23, %s1467_s27  ;;  %p1472_p0 = scmp.lt.s32.totalorder %s1103_s23, %s1888_s16 }
 0x7f8   : > { %p1473_p1 = scmp.lt.s32.totalorder %s1471_s28, %s1467_s27 }
 0x7f9   : > { %p1469_p12 = pnand %p1468_p11, %p1672_p3 }
 0x7fa   : > { %p1474_p2 = por %p1473_p1, %p1472_p0 }
 0x7fb   : > { %p1470_p13 = pneg %p1469_p12 }
 0x7fd   : > { %p1475_p4 = pnand %p1474_p2, %p1470_p13 }
 0x7ff   : > { %1478 = shalt.err (!%p1475_p4)
}
 0x800   : > { %1357 = dma.vmem_to_hbm [thread:$0]  (%p1672_p3), %s1106_s18, 128, %s1103_s23, %s1092_s11  }
 0x801 PF: > { %s1890_s15 = sld [smem:[#allocation13_spill]] }
 0x802   : > { %s1891_s20 = sld [smem:[#allocation7_spill]] }
 0x807   : > { %p1363_p5 = scmp.ge.s32.totalorder %s1890_s15, 2 }
 0x808   : > { %s1117_s24 = sand.u32 1, %s1891_s20  }
 0x809   : > { %p1360_p6 = pnand %p1363_p5, %p1682_p9  ;;  %s1118_s14 = scalar_lea.sflag [#allocation5], %s1117_s24 }
 0x80b   : > { %p1361_p7 = pneg %p1360_p6 }
 0x80d   : > { %1512 = dma.done.wait (%p1361_p7), %s1118_s14, 128  }
 0x80e   : > { %1514 = vsyncadd (%p1361_p7), %s1118_s14, 4294967168  ;;  %s26_s15 = sadd.s32 1, %s1890_s15   ;;  %s1893_s25 = sld [smem:[#allocation8_spill]] }
 0x80f   : > { %p23_p8 = scmp.ge.s32.totalorder %s26_s15, 18   ;;  %s1894_s26 = sld [smem:[#allocation9_spill]] }
 0x810   : > { %s1895_s27 = sld [smem:[#allocation18_spill]] }
 0x811   : > { %s1896_s28 = sld [smem:[#allocation11_spill]]  ;;  %25 = sbr.rel (!%p23_p8) target bundleno = 9 (0x9), region = 127 }
 0x812   : > { %s1897_s29 = sld [smem:[#allocation12_spill]] }
 0x813   : > { %s1898_s30 = sld [smem:[#allocation14_spill]] }
 0x814   : > { %s1899_s14 = sld [smem:[#allocation16_spill]] }
 0x816   :  { %1123 = vsyncpa [#allocation5], 1 }
 0x817   :  { %1125 = vsyncpa [#allocation5 + $0x1], 1 }

</bundles_post_ra>
